<compile_context>
chip_gen: v5e
topology: v5e:2x2
jax: 0.10.0
libtpu: 0.0.40
codegen_flags: <defaults>
</compile_context>

<pallas_src>
import jax
import jax.numpy as jnp
from jax import lax
from jax.experimental import pallas as pl
from jax.experimental.pallas import tpu as pltpu


def _round_up(x, m):
    return ((x + m - 1) // m) * m


def additive_attention_kernel(enc_ref, dec_ref, w1_ref, w2_ref, v_ref,
                              ctx_ref, probs_ref):
    enc = enc_ref[...]                     # [TB, T, Ep]  bf16
    dec = dec_ref[...]                     # [TB, D]      bf16
    w1 = w1_ref[...]                       # [Ip, Ep]     bf16 (nn.Linear layout)
    w2 = w2_ref[...]                       # [Ip, D]      bf16
    v_row = v_ref[0, :].astype(jnp.float32)  # [Ip]

    TB, T, Ep = enc.shape

    # --- w1(encoder_states): one big 2-D bf16 MXU matmul over the flattened
    # tile.  Ep is a multiple of 128, so the merge of (TB, T) is layout-free.
    enc2d = enc.reshape(TB * T, Ep)                              # [TB*T, Ep]
    enc_proj = lax.dot_general(
        enc2d, w1, (((1,), (1,)), ((), ())),
        preferred_element_type=jnp.float32)                      # [TB*T, Ip] f32

    # --- w2(decoder_state): [TB, Ip]
    dec_proj = lax.dot_general(
        dec, w2, (((1,), (1,)), ((), ())),
        preferred_element_type=jnp.float32)                      # [TB, Ip] f32

    # --- tanh(w1(enc_t) + w2(dec)) broadcast over T (f32 on VPU/EUP).
    h = jnp.tanh(enc_proj.reshape(TB, T, -1) + dec_proj[:, None, :])  # [TB,T,Ip]

    # --- v(h): VPU broadcast-multiply + XLU lane reduction (avoid N=1 MXU).
    scores = jnp.sum(h * v_row[None, None, :], axis=-1)          # [TB, T]

    # --- softmax over T (torch dim=1), numerically stable, exact divide.
    m = jnp.max(scores, axis=-1, keepdims=True)                  # [TB, 1]
    e = jnp.exp(scores - m)                                      # [TB, T]
    denom = jnp.sum(e, axis=-1, keepdims=True)                   # [TB, 1]
    probs = e / denom                                            # [TB, T]

    # --- context: VPU weighted sum + XLU sublane reduction over T.
    ctx = jnp.sum(probs[:, :, None] * enc.astype(jnp.float32), axis=1)  # [TB, Ep]

    ctx_ref[...] = ctx.astype(ctx_ref.dtype)
    probs_ref[...] = probs.astype(probs_ref.dtype)               # lane-dense [TB, T]


def _vmem_capacity_bytes():
    """Generation-aware VMEM capacity; conservative fallback (v7x per-TC)."""
    try:
        return int(pltpu.get_tpu_info().vmem_capacity_bytes)
    except Exception:
        return 64 << 20


def _choose_batch_tile(B, T, Ep, D, Ip, vmem_cap):
    """Largest multiple-of-8 batch tile that fits the VMEM budget, with
    >= 2 grid steps whenever the batch allows it."""
    # Per-batch-row bytes in flight: double-buffered pipeline tiles + the f32
    # enc_proj / h / ctx temporaries the previous budget ignored.
    row_bytes = (
        2 * (T * Ep * 2)       # encoder tile (bf16), double-buffered
        + 2 * (D * 2)          # decoder tile (bf16), double-buffered
        + 2 * (Ep * 4)         # ctx output (f32), double-buffered
        + 2 * (T * 4)          # probs output (f32), double-buffered
        + T * Ep * 2           # possible (TB,T,Ep)->(TB*T,Ep) copy (safety)
        + 2 * (T * Ip * 4)     # enc_proj + h (f32)
        + 2 * (T * Ep * 4)     # ctx weighted-sum temporaries (f32)
        + Ip * 4               # dec_proj row (f32)
        + 8 * T * 4            # scores / exp / softmax scalars
    )
    weight_bytes = 2 * 2 * (Ip * Ep + Ip * D + Ip)   # bf16, double-buffered
    target = min(vmem_cap // 2, 40 << 20)            # working-set cap (safe on v7x)
    avail = max(target - weight_bytes - (2 << 20), 8 * row_bytes)
    tb_vmem = max(8, (avail // row_bytes) // 8 * 8)
    # At least 2 grid steps when possible (v7x megacore split + pipelining).
    tb_steps = max(8, _round_up((B + 1) // 2, 8))
    tb = min(tb_vmem, tb_steps, _round_up(B, 8))
    est_bytes = weight_bytes + tb * row_bytes
    return tb, est_bytes


def additive_attention(encoder_states, decoder_state, w1, w2, v):
    """encoder_states: [B,T,E], decoder_state: [B,D],
       w1: [I,E], w2: [I,D], v: [1,I]  (PyTorch nn.Linear weight layouts).
       Returns (context [B,E] f32, attention_probs [B,T,1] f32)."""
    B, T, E = encoder_states.shape
    D = decoder_state.shape[1]
    I = w1.shape[0]

    Ep = _round_up(E, 128)          # lane-pad encoder dim (exact: zero features)
    Ip = _round_up(I, 128)          # lane-pad internal dim (exact: zero rows/cols)

    vmem_cap = _vmem_capacity_bytes()
    TB, est_bytes = _choose_batch_tile(B, T, Ep, D, Ip, vmem_cap)
    Bp = _round_up(B, TB)           # pad batch so every tile is full
    grid = (Bp // TB,)

    cdt = jnp.bfloat16              # MXU / DMA compute dtype

    enc_p = jnp.pad(encoder_states.astype(cdt),
                    ((0, Bp - B), (0, 0), (0, Ep - E)))
    dec_p = jnp.pad(decoder_state.astype(cdt), ((0, Bp - B), (0, 0)))
    w1_p = jnp.pad(w1.astype(cdt), ((0, Ip - I), (0, Ep - E)))
    w2_p = jnp.pad(w2.astype(cdt), ((0, Ip - I), (0, 0)))
    v_p = jnp.pad(v.astype(cdt), ((0, 0), (0, Ip - I)))

    vmem_limit = int(min(max(est_bytes + (4 << 20), 16 << 20),
                         max(vmem_cap - (8 << 20), 16 << 20)))

    flops = (2 * Bp * T * Ep * Ip       # w1 projection
             + 2 * Bp * D * Ip          # w2 projection
             + 2 * Bp * T * Ip          # v reduction
             + 2 * Bp * T * Ep)         # context weighted sum
    transcendentals = Bp * T * Ip + Bp * T     # tanh + exp
    bytes_accessed = (Bp * T * Ep * 2 + Bp * D * 2
                      + (Ip * Ep + Ip * D + Ip) * 2
                      + Bp * Ep * 4 + Bp * T * 4)

    ctx, probs = pl.pallas_call(
        additive_attention_kernel,
        out_shape=(
            jax.ShapeDtypeStruct((Bp, Ep), jnp.float32),
            jax.ShapeDtypeStruct((Bp, T), jnp.float32),   # lane-dense probs
        ),
        grid=grid,
        in_specs=[
            pl.BlockSpec((TB, T, Ep), lambda b: (b, 0, 0)),   # encoder tile
            pl.BlockSpec((TB, D), lambda b: (b, 0)),          # decoder tile
            pl.BlockSpec((Ip, Ep), lambda b: (0, 0)),         # w1 (resident)
            pl.BlockSpec((Ip, D), lambda b: (0, 0)),          # w2 (resident)
            pl.BlockSpec((1, Ip), lambda b: (0, 0)),          # v  (resident)
        ],
        out_specs=(
            pl.BlockSpec((TB, Ep), lambda b: (b, 0)),
            pl.BlockSpec((TB, T), lambda b: (b, 0)),
        ),
        compiler_params=pltpu.CompilerParams(
            dimension_semantics=("parallel",),
            vmem_limit_bytes=vmem_limit,
        ),
        cost_estimate=pl.CostEstimate(
            flops=flops,
            transcendentals=transcendentals,
            bytes_accessed=bytes_accessed),
    )(enc_p, dec_p, w1_p, w2_p, v_p)

    # Strip padding; match torch's unsqueeze(softmax(scores, dim=1), dim=2).
    return ctx[:B, :E], probs[:B][..., None]


def reference(encoder_states, decoder_state, w1, w2, v):
    enc_proj = jnp.einsum('bte,ie->bti', encoder_states, w1)
    dec_proj = jnp.einsum('bd,id->bi', decoder_state, w2)
    h = jnp.tanh(enc_proj + dec_proj[:, None, :])
    scores = jnp.einsum('bti,oi->bto', h, v)[..., 0]          # [B, T]
    probs = jax.nn.softmax(scores, axis=1)[..., None]         # [B, T, 1]
    ctx = jnp.sum(probs * encoder_states, axis=1)
    return ctx, probs


if __name__ == "__main__":
    B, T, E, D = 2, 8, 32, 32
    I = (E + D) // 2  # internal_dim default

    key = jax.random.PRNGKey(0)
    k_enc, k_dec, k_w1, k_w2, k_v = jax.random.split(key, 5)

    encoder_states = jax.random.normal(k_enc, (B, T, E), dtype=jnp.float32)
    decoder_state = jax.random.normal(k_dec, (B, D), dtype=jnp.float32)

    # Deterministic synthetic weights in nn.Linear(bias=False) layouts.
    w1 = jax.random.normal(k_w1, (I, E), dtype=jnp.float32) * 0.1
    w2 = jax.random.normal(k_w2, (I, D), dtype=jnp.float32) * 0.1
    v = jax.random.normal(k_v, (1, I), dtype=jnp.float32) * 0.1

    ctx, probs = additive_attention(encoder_states, decoder_state, w1, w2, v)
    jax.block_until_ready((ctx, probs))

    ctx_ref, probs_ref = reference(encoder_states, decoder_state, w1, w2, v)
    assert ctx.shape == (B, E) and probs.shape == (B, T, 1)
    # Tolerance accounts for bf16 MXU inputs (f32 accumulation).
    assert jnp.allclose(ctx, ctx_ref, atol=2e-2, rtol=2e-2)
    assert jnp.allclose(probs, probs_ref, atol=2e-2, rtol=2e-2)

    print("KERNEL_OK")
</pallas_src>

<mosaic_0001>
module attributes {stable_mosaic.version = 11 : i64} {
  func.func @additive_attention_kernel(%arg0: i32, %arg1: memref<8x8x128xbf16, #tpu.memory_space<vmem>>, %arg2: memref<8x32xbf16, #tpu.memory_space<vmem>>, %arg3: memref<128x128xbf16, #tpu.memory_space<vmem>>, %arg4: memref<128x32xbf16, #tpu.memory_space<vmem>>, %arg5: memref<1x128xbf16, #tpu.memory_space<vmem>>, %arg6: memref<8x128xf32, #tpu.memory_space<vmem>>, %arg7: memref<8x8xf32, #tpu.memory_space<vmem>>) attributes {dimension_semantics = [#tpu.dimension_semantics<parallel>], iteration_bounds = array<i64: 1>, scalar_prefetch = 0 : i64, scratch_operands = 0 : i64, tpu.core_type = #tpu.core_type<tc>, window_params = [{transform_indices = @transform_0, window_bounds = array<i64: 8, 8, 128>}, {transform_indices = @transform_1, window_bounds = array<i64: 8, 32>}, {pipeline_mode = #tpu.pipeline_mode<synchronous>, transform_indices = @transform_2, window_bounds = array<i64: 128, 128>}, {pipeline_mode = #tpu.pipeline_mode<synchronous>, transform_indices = @transform_3, window_bounds = array<i64: 128, 32>}, {pipeline_mode = #tpu.pipeline_mode<synchronous>, transform_indices = @transform_4, window_bounds = array<i64: 1, 128>}, {transform_indices = @transform_5, window_bounds = array<i64: 8, 128>}, {transform_indices = @transform_6, window_bounds = array<i64: 8, 8>}]} {
    %c0 = arith.constant 0 : index
    %c0_0 = arith.constant 0 : index
    %c0_1 = arith.constant 0 : index
    %0 = vector.load %arg1[%c0, %c0_0, %c0_1] : memref<8x8x128xbf16, #tpu.memory_space<vmem>>, vector<8x8x128xbf16>
    %c0_2 = arith.constant 0 : index
    %c0_3 = arith.constant 0 : index
    %1 = vector.load %arg2[%c0_2, %c0_3] : memref<8x32xbf16, #tpu.memory_space<vmem>>, vector<8x32xbf16>
    %c0_4 = arith.constant 0 : index
    %c0_5 = arith.constant 0 : index
    %2 = vector.load %arg3[%c0_4, %c0_5] : memref<128x128xbf16, #tpu.memory_space<vmem>>, vector<128x128xbf16>
    %c0_6 = arith.constant 0 : index
    %c0_7 = arith.constant 0 : index
    %3 = vector.load %arg4[%c0_6, %c0_7] : memref<128x32xbf16, #tpu.memory_space<vmem>>, vector<128x32xbf16>
    %c0_8 = arith.constant 0 : index
    %c0_9 = arith.constant 0 : index
    %4 = vector.load %arg5[%c0_8, %c0_9] : memref<1x128xbf16, #tpu.memory_space<vmem>>, vector<1x128xbf16>
    %5 = vector.shape_cast %4 : vector<1x128xbf16> to vector<128xbf16>
    %6 = arith.extf %5 : vector<128xbf16> to vector<128xf32>
    %7 = vector.shape_cast %0 : vector<8x8x128xbf16> to vector<64x128xbf16>
    %cst = arith.constant dense<0.000000e+00> : vector<64x128xf32>
    %8 = tpu.matmul %7, %2, %cst {dimension_numbers = #tpu.dot_dimension_numbers<[1], [1], [0], [0], [0, 0, 1, 0], [], []>} : vector<64x128xbf16>, vector<128x128xbf16>, vector<64x128xf32> -> vector<64x128xf32>
    %cst_10 = arith.constant dense<0.000000e+00> : vector<8x128xf32>
    %9 = tpu.matmul %1, %3, %cst_10 {dimension_numbers = #tpu.dot_dimension_numbers<[1], [1], [0], [0], [0, 0, 1, 0], [], []>} : vector<8x32xbf16>, vector<128x32xbf16>, vector<8x128xf32> -> vector<8x128xf32>
    %10 = vector.shape_cast %8 : vector<64x128xf32> to vector<8x8x128xf32>
    %11 = vector.shape_cast %9 : vector<8x128xf32> to vector<8x1x128xf32>
    %12 = vector.broadcast %11 : vector<8x1x128xf32> to vector<8x8x128xf32>
    %13 = arith.addf %10, %12 : vector<8x8x128xf32>
    %14 = math.tanh %13 : vector<8x8x128xf32>
    %15 = vector.shape_cast %6 : vector<128xf32> to vector<1x1x128xf32>
    %16 = vector.broadcast %15 : vector<1x1x128xf32> to vector<8x8x128xf32>
    %17 = arith.mulf %14, %16 : vector<8x8x128xf32>
    %cst_11 = arith.constant dense<0.000000e+00> : vector<8x8xf32>
    %18 = vector.multi_reduction <add>, %17, %cst_11 [2] : vector<8x8x128xf32> to vector<8x8xf32>
    %cst_12 = arith.constant dense<0xFF800000> : vector<8xf32>
    %19 = vector.multi_reduction <maximumf>, %18, %cst_12 [1] : vector<8x8xf32> to vector<8xf32>
    %20 = vector.shape_cast %19 : vector<8xf32> to vector<8x1xf32>
    %21 = vector.broadcast %20 : vector<8x1xf32> to vector<8x8xf32>
    %22 = arith.subf %18, %21 : vector<8x8xf32>
    %23 = math.exp %22 : vector<8x8xf32>
    %cst_13 = arith.constant dense<0.000000e+00> : vector<8xf32>
    %24 = vector.multi_reduction <add>, %23, %cst_13 [1] : vector<8x8xf32> to vector<8xf32>
    %25 = vector.shape_cast %24 : vector<8xf32> to vector<8x1xf32>
    %26 = vector.broadcast %25 : vector<8x1xf32> to vector<8x8xf32>
    %27 = arith.divf %23, %26 : vector<8x8xf32>
    %28 = vector.shape_cast %27 : vector<8x8xf32> to vector<8x8x1xf32>
    %29 = arith.extf %0 : vector<8x8x128xbf16> to vector<8x8x128xf32>
    %30 = vector.broadcast %28 : vector<8x8x1xf32> to vector<8x8x128xf32>
    %31 = arith.mulf %30, %29 : vector<8x8x128xf32>
    %cst_14 = arith.constant dense<0.000000e+00> : vector<8x128xf32>
    %32 = vector.multi_reduction <add>, %31, %cst_14 [1] : vector<8x8x128xf32> to vector<8x128xf32>
    %c0_15 = arith.constant 0 : index
    %c0_16 = arith.constant 0 : index
    %33 = vector.load %arg6[%c0_15, %c0_16] : memref<8x128xf32, #tpu.memory_space<vmem>>, vector<8x128xf32>
    tpu.vector_store %arg6[%c0_15, %c0_16], %32 {strides = array<i32>} : memref<8x128xf32, #tpu.memory_space<vmem>>, vector<8x128xf32>,
    %c0_17 = arith.constant 0 : index
    %c0_18 = arith.constant 0 : index
    %34 = vector.load %arg7[%c0_17, %c0_18] : memref<8x8xf32, #tpu.memory_space<vmem>>, vector<8x8xf32>
    tpu.vector_store %arg7[%c0_17, %c0_18], %27 {strides = array<i32>} : memref<8x8xf32, #tpu.memory_space<vmem>>, vector<8x8xf32>,
    return
  }
  func.func @transform_0(%arg0: i32) -> (i32, i32, i32) {
    %c0_i32 = arith.constant 0 : i32
    %c0_i32_0 = arith.constant 0 : i32
    %c0_i32_1 = arith.constant 0 : i32
    return %arg0, %c0_i32, %c0_i32_0 : i32, i32, i32
  }
  func.func @transform_1(%arg0: i32) -> (i32, i32) {
    %c0_i32 = arith.constant 0 : i32
    %c0_i32_0 = arith.constant 0 : i32
    return %arg0, %c0_i32 : i32, i32
  }
  func.func @transform_2(%arg0: i32) -> (i32, i32) {
    %c0_i32 = arith.constant 0 : i32
    %c0_i32_0 = arith.constant 0 : i32
    %c0_i32_1 = arith.constant 0 : i32
    return %c0_i32, %c0_i32_0 : i32, i32
  }
  func.func @transform_3(%arg0: i32) -> (i32, i32) {
    %c0_i32 = arith.constant 0 : i32
    %c0_i32_0 = arith.constant 0 : i32
    %c0_i32_1 = arith.constant 0 : i32
    return %c0_i32, %c0_i32_0 : i32, i32
  }
  func.func @transform_4(%arg0: i32) -> (i32, i32) {
    %c0_i32 = arith.constant 0 : i32
    %c0_i32_0 = arith.constant 0 : i32
    %c0_i32_1 = arith.constant 0 : i32
    return %c0_i32, %c0_i32_0 : i32, i32
  }
  func.func @transform_5(%arg0: i32) -> (i32, i32) {
    %c0_i32 = arith.constant 0 : i32
    %c0_i32_0 = arith.constant 0 : i32
    return %arg0, %c0_i32 : i32, i32
  }
  func.func @transform_6(%arg0: i32) -> (i32, i32) {
    %c0_i32 = arith.constant 0 : i32
    %c0_i32_0 = arith.constant 0 : i32
    return %arg0, %c0_i32 : i32, i32
  }
}

</mosaic_0001>

<bundles_post_ra>
// kernel: tpu_custom_call.1
= control target key start
LH: loop header
LB: loop body
LE: loop exit
PB: predicated region body
PF: predicated region fallthrough
CT: control target
= control target key end

     0   :  { %12 = vsyncpa [#allocation3], 0  ;;  %s1323_s0 = inlined_call_operand.hbm [shape: bf16[8,8,128], index: 0, kind: input, shape index: {}]   ;;  %s1324_s1 = inlined_call_operand.vmem [shape: bf16[8,32], index: 1, kind: input, shape index: {}]   ;;  %s1325_s2 = inlined_call_operand.vmem [shape: bf16[128,128], index: 2, kind: input, shape index: {}]   ;;  %s1326_s3 = inlined_call_operand.vmem [shape: bf16[128,32], index: 3, kind: input, shape index: {}]   ;;  %s1327_s4 = inlined_call_operand.vmem [shape: bf16[1,128], index: 4, kind: input, shape index: {}]   ;;  %s1328_s5 = inlined_call_operand.hbm [shape: f32[8,128], index: 5, kind: output, shape index: {0}]   ;;  %s1329_s6 = inlined_call_operand.hbm [shape: f32[8,8], index: 6, kind: output, shape index: {1}]  }
   0x1   :  { %13 = vsyncpa [#allocation4], 0 }
   0x2   :  { %14 = vsyncpa [#allocation7], 0  ;;  %s19_s23 = sshll.u32 %s1323_s0, 4  ;;  %s1019_s24 = smov [#allocation2]   ;;  %s20_s23 = int_to_ptr.hbm [resolvable:$true] %s19_s23 }
   0x3   :  { %s21_s25 = sshll.u32 %s1019_s24, 4  ;;  %s1020_s26 = smov 64   ;;  %s22_s25 = int_to_ptr.vmem [resolvable:$true] %s21_s25 }
   0x4   :  { %s1021_s27 = smov 4  }
   0x5   :  { %27 = dma.hbm_to_vmem [thread:$0]  %s20_s23, 512, %s22_s25, [#allocation3], %s1020_s26, %s1020_s26, %s1021_s27  }
   0x6   :  { %1013 = dma.done.wait [#allocation3], 512  }
   0x7   :  { %1014 = vsyncadd [#allocation3], 4294966784  ;;  %vm224_vm0 = vcmask 261120   ;;  %v859_v0 = vld [vmem:[%s1325_s2 + $0x38] sm:$0xff]  ;;  %v866_v3 = vld [vmem:[%s1326_s3 + $0x30] sm:$0xff]  ;;  %vm348_vm1 = vcmask 1041409  }
   0x8   :  { %v867_v1 = vld [vmem:[%s1326_s3 + $0x38] sm:$0xff]  ;;  %868 = vmatpush.bf16.xpose.msra.mxu2 %v859_v0  ;;  %869 = vmatpush.bf16.xpose.msra.mxu3 %v859_v0  ;;  %v858_v4 = vld [vmem:[%s1325_s2 + $0x30] sm:$0xff]  ;;  %v247_v5 = vsel %vm224_vm0, %v866_v3, 0  ;;  %v865_v6 = vld [vmem:[%s1326_s3 + $0x28] sm:$0xff]  ;;  %vm350_vm2 = vcmask 1042434   ;;  %vm352_vm3 = vcmask 1043459  }
   0x9   :  { %v250_v2 = vsel %vm224_vm0, %v867_v1, 0  ;;  %155 = vmatpush.bf16.xpose.msra.mxu0 %v859_v0  ;;  %v857_v7 = vld [vmem:[%s1325_s2 + $0x28] sm:$0xff]  ;;  %v244_v8 = vsel %vm224_vm0, %v865_v6, 0  ;;  %v864_v9 = vld [vmem:[%s1326_s3 + $0x20] sm:$0xff]  ;;  %v863_v12 = vld [vmem:[%s1326_s3 + $0x18] sm:$0xff]  ;;  %vm354_vm4 = vcmask 1044484  }
   0xa   :  { %252 = vmatpush.bf16.xpose.msra.mxu1 %v250_v2  ;;  %v856_v10 = vld [vmem:[%s1325_s2 + $0x20] sm:$0xff]  ;;  %v241_v11 = vsel %vm224_vm0, %v864_v9, 0  ;;  %v855_v13 = vld [vmem:[%s1325_s2 + $0x18] sm:$0xff]  ;;  %v238_v14 = vsel %vm224_vm0, %v863_v12, 0  ;;  %v862_v15 = vld [vmem:[%s1326_s3 + $0x10] sm:$0xff]  ;;  %vm356_vm5 = vcmask 1045509  }
   0xb   :  { %v854_v16 = vld [vmem:[%s1325_s2 + $0x10] sm:$0xff]  ;;  %v235_v17 = vsel %vm224_vm0, %v862_v15, 0  ;;  %v861_v18 = vld [vmem:[%s1326_s3 + $0x8] sm:$0xff]  ;;  %v860_v21 = vld [vmem:[%s1326_s3] sm:$0xff]  ;;  %vm358_vm6 = vcmask 1046534   ;;  %vm1331_vm7 = vcmask 1047559  }
   0xc   :  { %v853_v19 = vld [vmem:[%s1325_s2 + $0x8] sm:$0xff]  ;;  %v232_v20 = vsel %vm224_vm0, %v861_v18, 0  ;;  %v852_v22 = vld [vmem:[%s1325_s2] sm:$0xff]  ;;  %v229_v23 = vsel %vm224_vm0, %v860_v21, 0  ;;  %v850_v25 = vld [vmem:[#allocation2 + $0x10] sm:$0xff]  ;;  %vm1330_vm8 = vcmask 64512  }
   0xd   :  { %v849_v24 = vld [vmem:[#allocation2 + $0x8] sm:$0xff]  ;;  %v848_v26 = vld [vmem:[#allocation2] sm:$0xff]  ;;  %v851_v28 = vld [vmem:[#allocation2 + $0x18] sm:$0xff]  ;;  %s752_s14 = sshll.u32 %s1329_s6, 4  ;;  %s1024_s6 = smov [#allocation5]   ;;  %s753_s14 = int_to_ptr.hbm [resolvable:$true] %s752_s14 }
   0xe   :  { %v48_v27 = vld [vmem:[%s1324_s1] sm:$0xf]  ;;  %s1023_s1 = smov [#allocation6]   ;;  %s739_s15 = sshll.u32 %s1024_s6, 4  ;;  %s740_s15 = int_to_ptr.vmem [resolvable:$true] %s739_s15 }
   0xf   :  { %v81_v35 = vld [vmem:[%s1327_s4] sm:$0x1]  ;;  %s750_s4 = sshll.u32 %s1023_s1, 4  ;;  %s741_s18 = sshll.u32 %s1328_s5, 4  ;;  %s751_s4 = int_to_ptr.vmem [resolvable:$true] %s750_s4  ;;  %s742_s18 = int_to_ptr.hbm [resolvable:$true] %s741_s18 }
  0x10   :  { %870 = vmatpush.bf16.xpose.msra.mxu2 %v858_v4  ;;  %871 = vmatpush.bf16.xpose.msra.mxu3 %v858_v4  ;;  %v82_v39 = vunpack.c.l.bf16 %v81_v35 }
  0x11   :  { %156 = vmatpush.bf16.xpose.msra.mxu0 %v858_v4 }
  0x12   :  { %253 = vmatpush.bf16.xpose.msra.mxu1 %v247_v5  ;;  %v305_v49 = vperm.slane %v82_v39, 0 }
  0x18   :  { %872 = vmatpush.bf16.xpose.msra.mxu2 %v857_v7  ;;  %873 = vmatpush.bf16.xpose.msra.mxu3 %v857_v7 }
  0x19   :  { %157 = vmatpush.bf16.xpose.msra.mxu0 %v857_v7 }
  0x1a   :  { %254 = vmatpush.bf16.xpose.msra.mxu1 %v244_v8 }
  0x20   :  { %874 = vmatpush.bf16.xpose.msra.mxu2 %v856_v10  ;;  %875 = vmatpush.bf16.xpose.msra.mxu3 %v856_v10 }
  0x21   :  { %158 = vmatpush.bf16.xpose.msra.mxu0 %v856_v10 }
  0x22   :  { %255 = vmatpush.bf16.xpose.msra.mxu1 %v241_v11 }
  0x28   :  { %876 = vmatpush.bf16.xpose.msra.mxu2 %v855_v13  ;;  %877 = vmatpush.bf16.xpose.msra.mxu3 %v855_v13 }
  0x29   :  { %159 = vmatpush.bf16.xpose.msra.mxu0 %v855_v13 }
  0x2a   :  { %256 = vmatpush.bf16.xpose.msra.mxu1 %v238_v14 }
  0x30   :  { %878 = vmatpush.bf16.xpose.msra.mxu2 %v854_v16  ;;  %879 = vmatpush.bf16.xpose.msra.mxu3 %v854_v16 }
  0x31   :  { %160 = vmatpush.bf16.xpose.msra.mxu0 %v854_v16 }
  0x32   :  { %257 = vmatpush.bf16.xpose.msra.mxu1 %v235_v17 }
  0x38   :  { %880 = vmatpush.bf16.xpose.msra.mxu2 %v853_v19  ;;  %881 = vmatpush.bf16.xpose.msra.mxu3 %v853_v19 }
  0x39   :  { %161 = vmatpush.bf16.xpose.msra.mxu0 %v853_v19  ;;  %v338_v19 = vlaneseq }
  0x3a   :  { %258 = vmatpush.bf16.xpose.msra.mxu1 %v232_v20 }
  0x3b   :  { %v1126_v21 = vand.u32 127, %v338_v19 }
  0x40   :  { %882 = vmatpush.bf16.xpose.msra.mxu2 %v852_v22  ;;  %883 = vmatpush.bf16.xpose.msra.mxu3 %v852_v22 }
  0x41   :  { %162 = vmatpush.bf16.xpose.msra.mxu0 %v852_v22 }
  0x42   :  { %259 = vmatpush.bf16.xpose.msra.mxu1 %v229_v23 }
  0x47   :  { %168 = vmatmul.bf16.vlgmr.msra.gmra.mxu2 %v849_v24  ;;  %173 = vmatmul.bf16.vlgmr.msra.gmra.mxu3 %v850_v25 }
  0x48   :  { %163 = vmatmul.bf16.vlgmr.msra.gmra.mxu0 %v848_v26 }
  0x49   :  { %847 = vmatmul.msk.bf16.vlgmr.msra.gmra.mxu1 %vm224_vm0, %v48_v27 }
  0x57   :  { %178 = vmatmul.bf16.gmra.mxu3 %v851_v28 }
  0xc5   :  { %v164_v30 = vpop.f32.mrf.mxu0 }
  0xc6   :  { %v261_v29 = vpop.f32.mrf.mxu1 }
  0xc7   :  { %v273_v31 = vperm.slane %v261_v29, 0  ;;  %v267_v32 = vrot.slane %v261_v29, 2  ;;  %v269_v33 = vrot.slane %v261_v29, 4  ;;  %v266_v34 = vrot.slane %v261_v29, 1 }
  0xc8   :  { %v268_v45 = vrot.slane %v261_v29, 3  ;;  %v270_v46 = vrot.slane %v261_v29, 5  ;;  %v271_v63 = vrot.slane %v261_v29, 6  ;;  %v272_v9 = vrot.slane %v261_v29, 7 }
  0xc9   :  { %v289_v36 = vadd.f32 %v273_v31, %v164_v30  ;;  %v275_v37 = vperm.slane %v267_v32, 0  ;;  %v277_v38 = vperm.slane %v269_v33, 0  ;;  %v274_v42 = vperm.slane %v266_v34, 0 }
  0xca   :  { %v169_v40 = vpop.f32.mrf.mxu2  ;;  %v174_v41 = vpop.f32.mrf.mxu3  ;;  %v276_v51 = vperm.slane %v268_v45, 0  ;;  %v278_v52 = vperm.slane %v270_v46, 0  ;;  %v279_v2 = vperm.slane %v271_v63, 0  ;;  %v280_v10 = vperm.slane %v272_v9, 0 }
  0xcb   :  { %893 = vtanh.f32 %v289_v36  ;;  %v291_v43 = vadd.f32 %v275_v37, %v169_v40  ;;  %v293_v44 = vadd.f32 %v277_v38, %v174_v41 }
  0xcd   :  { %895 = vtanh.f32 %v291_v43  ;;  %v166_v48 = vpop.f32.mrf.mxu0  ;;  %v1022_v43 = vmov 0  }
  0xce   :  { %v263_v47 = vpop.f32.mrf.mxu1  ;;  %897 = vtanh.f32 %v293_v44  ;;  %v290_v50 = vadd.f32 %v274_v42, %v166_v48  ;;  %892 = vset.pattern.permute.xlu2 %v1022_v43  ;;  %891 = vset.pattern.permute.xlu1 %v1022_v43 }
  0xcf   :  { %890 = vset.pattern.permute.xlu0 %v1022_v43 }
  0xd0   :  { %899 = vtanh.f32 %v290_v50 }
  0xd1   :  { %v894_v53 = vpop.eup %893 }
  0xd2   :  { %v306_v54 = vmul.f32 %v894_v53, %v305_v49  ;;  %v171_v55 = vpop.f32.mrf.mxu2  ;;  %v176_v56 = vpop.f32.mrf.mxu3 }
  0xd3   :  { %v896_v57 = vpop.eup %895  ;;  %v292_v58 = vadd.f32 %v276_v51, %v171_v55  ;;  %v294_v59 = vadd.f32 %v278_v52, %v176_v56 }
  0xd4   :  { %314 = vadd.xlane.f32.xlu0 %v306_v54  ;;  %v898_v60 = vpop.eup %897  ;;  %v308_v61 = vmul.f32 %v896_v57, %v305_v49 }
  0xd5   :  { %901 = vtanh.f32 %v292_v58  ;;  %v310_v62 = vmul.f32 %v898_v60, %v305_v49 }
  0xd6   :  { %v900_v0 = vpop.eup %899  ;;  %903 = vtanh.f32 %v294_v59  ;;  %318 = vadd.xlane.f32.xlu1 %v308_v61 }
  0xd7   :  { %322 = vadd.xlane.f32.xlu2 %v310_v62  ;;  %v307_v1 = vmul.f32 %v900_v0, %v305_v49 }
  0xda   :  { %v179_v3 = vpop.f32.mrf.mxu3 }
  0xdb   :  { %v902_v4 = vpop.eup %901  ;;  %v295_v5 = vadd.f32 %v279_v2, %v179_v3 }
  0xdc   :  { %316 = vadd.xlane.f32.xlu0 %v307_v1  ;;  %v904_v6 = vpop.eup %903  ;;  %v309_v7 = vmul.f32 %v902_v4, %v305_v49 }
  0xdd   :  { %905 = vtanh.f32 %v295_v5  ;;  %v311_v8 = vmul.f32 %v904_v6, %v305_v49 }
  0xde   :  { %320 = vadd.xlane.f32.xlu1 %v309_v7 }
  0xdf   :  { %324 = vadd.xlane.f32.xlu2 %v311_v8 }
  0xe2   :  { %v181_v11 = vpop.f32.mrf.mxu3 }
  0xe3   :  { %v906_v12 = vpop.eup %905  ;;  %v296_v13 = vadd.f32 %v280_v10, %v181_v11 }
  0xe4   :  { %v312_v14 = vmul.f32 %v906_v12, %v305_v49 }
  0xe5   :  { %907 = vtanh.f32 %v296_v13 }
  0xe6   :  { %326 = vadd.xlane.f32.xlu0 %v312_v14 }
  0xeb   :  { %v908_v15 = vpop.eup %907 }
  0xec   :  { %v313_v16 = vmul.f32 %v908_v15, %v305_v49 }
  0xee   :  { %328 = vadd.xlane.f32.xlu1 %v313_v16 }
 0x147   :  { %v315_v17 = vpop.xlane.xlu0 %314 }
 0x148   :  { %v340_v22 = vperm.slane %v315_v17, %v1126_v21 }
 0x149   :  { %v319_v18 = vpop.xlane.xlu1 %318 }
 0x14a   :  { %v323_v24 = vpop.xlane.xlu2 %322  ;;  %v342_v25 = vperm.slane %v319_v18, %v1126_v21 }
 0x14b   :  { %v344_v32 = vperm.slane %v323_v24, %v1126_v21 }
 0x14f   :  { %v317_v20 = vpop.xlane.xlu0 %316 }
 0x150   :  { %v341_v23 = vperm.slane %v317_v20, %v1126_v21 }
 0x151   :  { %v321_v26 = vpop.xlane.xlu1 %320 }
 0x152   :  { %v349_v27 = vsel %vm348_vm1, %v341_v23, %v340_v22  ;;  %v343_v28 = vperm.slane %v321_v26, %v1126_v21  ;;  %v325_v33 = vpop.xlane.xlu2 %324 }
 0x153   :  { %v351_v29 = vsel %vm350_vm2, %v342_v25, %v349_v27  ;;  %v345_v36 = vperm.slane %v325_v33, %v1126_v21 }
 0x154   :  { %v353_v30 = vsel %vm352_vm3, %v343_v28, %v351_v29 }
 0x155   :  { %v355_v35 = vsel %vm354_vm4, %v344_v32, %v353_v30 }
 0x156   :  { %v357_v39 = vsel %vm356_vm5, %v345_v36, %v355_v35 }
 0x159   :  { %v327_v31 = vpop.xlane.xlu0 %326 }
 0x15a   :  { %v346_v34 = vperm.slane %v327_v31, %v1126_v21 }
 0x15c   :  { %v359_v40 = vsel %vm358_vm6, %v346_v34, %v357_v39 }
 0x161   :  { %v329_v37 = vpop.xlane.xlu1 %328 }
 0x162   :  { %v347_v38 = vperm.slane %v329_v37, %v1126_v21 }
 0x164   :  { %v361_v41 = vsel %vm1331_vm7, %v347_v38, %v359_v40 }
 0x165   :  { %v364_v42 = vsel %vm1330_vm8, %v361_v41, -inf }
 0x166   :  { %365 = vmax.xlane.f32.xlu2 %v364_v42 }
 0x1d9   :  { %v366_v44 = vpop.xlane.xlu2 %365 }
 0x1da   :  { %v370_v45 = vperm.slane %v366_v44, 2  ;;  %v369_v46 = vperm.slane %v366_v44, 1  ;;  %v368_v47 = vperm.slane %v366_v44, 0  ;;  %v371_v51 = vperm.slane %v366_v44, 3 }
 0x1db   :  { %v372_v52 = vperm.slane %v366_v44, 4  ;;  %v375_v53 = vperm.slane %v366_v44, 7  ;;  %v373_v61 = vperm.slane %v366_v44, 5  ;;  %v374_v63 = vperm.slane %v366_v44, 6 }
 0x1dc   :  { %v386_v48 = vsub.f32 %v319_v18, %v370_v45  ;;  %v385_v49 = vsub.f32 %v317_v20, %v369_v46  ;;  %v384_v50 = vsub.f32 %v315_v17, %v368_v47  ;;  %v387_v57 = vsub.f32 %v321_v26, %v371_v51 }
 0x1dd   :  { %v388_v58 = vsub.f32 %v323_v24, %v372_v52  ;;  %v391_v59 = vsub.f32 %v329_v37, %v375_v53  ;;  %v389_v4 = vsub.f32 %v325_v33, %v373_v61  ;;  %v390_v5 = vsub.f32 %v327_v31, %v374_v63 }
 0x1de   :  { %v396_v54 = vmul.f32 1.442695, %v386_v48  ;;  %v394_v55 = vmul.f32 1.442695, %v385_v49  ;;  %v392_v56 = vmul.f32 1.442695, %v384_v50 }
 0x1df   :  { %v398_v60 = vmul.f32 1.442695, %v387_v57  ;;  %v400_v62 = vmul.f32 1.442695, %v388_v58  ;;  %v406_v1 = vmul.f32 1.442695, %v391_v59 }
 0x1e0   :  { %909 = vpow2.f32 %v396_v54  ;;  %v402_v6 = vmul.f32 1.442695, %v389_v4  ;;  %v404_v7 = vmul.f32 1.442695, %v390_v5 }
 0x1e1   :  { %911 = vpow2.f32 %v394_v55 }
 0x1e2   :  { %913 = vpow2.f32 %v392_v56 }
 0x1e3   :  { %915 = vpow2.f32 %v398_v60 }
 0x1e4   :  { %917 = vpow2.f32 %v400_v62 }
 0x1e5   :  { %919 = vpow2.f32 %v406_v1 }
 0x1e6   :  { %v1144_v0 = vpop.eup %909  ;;  %921 = vpow2.f32 %v402_v6 }
 0x1e7   :  { %v1146_v2 = vpop.eup %911  ;;  %423 = vperm.xlu2 %892, %v1144_v0   ;;  %923 = vpow2.f32 %v404_v7 }
 0x1e8   :  { %v1149_v3 = vpop.eup %913  ;;  %420 = vperm.xlu1 %891, %v1146_v2  }
 0x1e9   :  { %417 = vperm.xlu0 %890, %v1149_v3   ;;  %v1153_v8 = vpop.eup %915 }
 0x1ea   :  { %v1155_v9 = vpop.eup %917 }
 0x1eb   :  { %v1158_v10 = vpop.eup %919 }
 0x1ec   :  { %v1162_v11 = vpop.eup %921 }
 0x1ed   :  { %v1164_v12 = vpop.eup %923 }
 0x1ef   :  { %426 = vperm.xlu2 %892, %v1153_v8  }
 0x1f0   :  { %429 = vperm.xlu1 %891, %v1155_v9  }
 0x1f1   :  { %438 = vperm.xlu0 %890, %v1158_v10  }
 0x1f7   :  { %432 = vperm.xlu2 %892, %v1162_v11  }
 0x1f8   :  { %435 = vperm.xlu1 %891, %v1164_v12  }
 0x241   :  { %v424_v13 = vpop.permute.xlu2 %423 }
 0x242   :  { %v442_v22 = vperm.slane %v424_v13, %v1126_v21 }
 0x249   :  { %v427_v16 = vpop.permute.xlu2 %426 }
 0x24a   :  { %v443_v25 = vperm.slane %v427_v16, %v1126_v21 }
 0x251   :  { %v433_v26 = vpop.permute.xlu2 %432 }
 0x252   :  { %v445_v30 = vperm.slane %v433_v26, %v1126_v21 }
 0x25a   :  { %v421_v14 = vpop.permute.xlu1 %420 }
 0x25b   :  { %v418_v15 = vpop.permute.xlu0 %417  ;;  %v441_v17 = vperm.slane %v421_v14, %v1126_v21 }
 0x25c   :  { %v440_v18 = vperm.slane %v418_v15, %v1126_v21 }
 0x25e   :  { %v448_v19 = vsel %vm348_vm1, %v441_v17, %v440_v18 }
 0x25f   :  { %v449_v23 = vsel %vm350_vm2, %v442_v22, %v448_v19 }
 0x260   :  { %v450_v27 = vsel %vm352_vm3, %v443_v25, %v449_v23 }
 0x262   :  { %v430_v20 = vpop.permute.xlu1 %429 }
 0x263   :  { %v444_v24 = vperm.slane %v430_v20, %v1126_v21  ;;  %v439_v29 = vpop.permute.xlu0 %438 }
 0x264   :  { %v447_v33 = vperm.slane %v439_v29, %v1126_v21 }
 0x265   :  { %v451_v28 = vsel %vm354_vm4, %v444_v24, %v450_v27 }
 0x266   :  { %v452_v34 = vsel %vm356_vm5, %v445_v30, %v451_v28 }
 0x26a   :  { %v436_v31 = vpop.permute.xlu1 %435 }
 0x26b   :  { %v446_v32 = vperm.slane %v436_v31, %v1126_v21 }
 0x26d   :  { %v453_v35 = vsel %vm358_vm6, %v446_v32, %v452_v34 }
 0x26e   :  { %v454_v36 = vsel %vm1331_vm7, %v447_v33, %v453_v35 }
 0x26f   :  { %v456_v37 = vsel %vm1330_vm8, %v454_v36, 0.0 }
 0x270   :  { %457 = vadd.xlane.f32.xlu2 %v456_v37 }
 0x2e3   :  { %v458_v38 = vpop.xlane.xlu2 %457 }
 0x2e4   :  { %v460_v39 = vperm.slane %v458_v38, 0  ;;  %v461_v40 = vperm.slane %v458_v38, 1  ;;  %v1184_v41 = vperm.slane %v458_v38, 2  ;;  %v1186_v42 = vperm.slane %v458_v38, 3 }
 0x2e5   :  { %v1188_v43 = vperm.slane %v458_v38, 4  ;;  %v1190_v44 = vperm.slane %v458_v38, 5  ;;  %v1196_v49 = vperm.slane %v458_v38, 7  ;;  %v1198_v52 = vperm.slane %v458_v38, 6 }
 0x2e6   :  { %925 = vrcp.f32 %v460_v39  ;;  %v500_v45 = vand.u32 2147483647, %v461_v40  ;;  %v502_v46 = vand.u32 2147483648, %v461_v40  ;;  %v485_v47 = vand.u32 2147483647, %v460_v39 }
 0x2e7   :  { %927 = vrcp.f32 %v461_v40  ;;  %v487_v50 = vand.u32 2147483648, %v460_v39  ;;  %vm496_vm9 = vweird.f32 %v461_v40  ;;  %vm481_vm11 = vweird.f32 %v460_v39 }
 0x2e8   :  { %929 = vrcp.f32 %v1184_v41  ;;  %vm1202_vm10 = vcmp.eq.f32.partialorder %v500_v45, 8.507059e+37  ;;  %v503_v58 = vor.u32 1.1754944e-38, %v502_v46  ;;  %vm1208_vm12 = vcmp.eq.f32.partialorder %v485_v47, 8.507059e+37 }
 0x2e9   :  { %931 = vrcp.f32 %v1186_v42  ;;  %v488_v1 = vor.u32 1.1754944e-38, %v487_v50  ;;  %v532_v18 = vand.u32 2147483648, %v1186_v42  ;;  %v517_v20 = vand.u32 2147483648, %v1184_v41 }
 0x2ea   :  { %933 = vrcp.f32 %v1188_v43  ;;  %v515_v34 = vand.u32 2147483647, %v1184_v41  ;;  %v530_v36 = vand.u32 2147483647, %v1186_v42  ;;  %v562_v46 = vand.u32 2147483648, %v1190_v44 }
 0x2eb   :  { %935 = vrcp.f32 %v1190_v44  ;;  %v545_v56 = vand.u32 2147483647, %v1188_v43 }
 0x2ec   :  { %v926_v48 = vpop.eup %925  ;;  %937 = vrcp.f32 %v1196_v49 }
 0x2ed   :  { %v928_v51 = vpop.eup %927  ;;  %v477_v53 = vmul.f32 %v926_v48, %v460_v39  ;;  %vm482_vm13 = vweird.f32 %v926_v48  ;;  %939 = vrcp.f32 %v1198_v52  ;;  %v518_v39 = vor.u32 1.1754944e-38, %v517_v20 }
 0x2ee   :  { %v1200_v54 = vpop.eup %929  ;;  %v492_v55 = vmul.f32 %v928_v51, %v461_v40  ;;  %vm497_vm14 = vweird.f32 %v928_v51  ;;  %vm483_vm15 = vmor %vm481_vm11, %vm482_vm13  ;;  %vm526_vm11 = vweird.f32 %v1186_v42  ;;  %vm531_vm13 = vcmp.eq.f32.partialorder %v530_v36, 8.507059e+37 }
 0x2ef   :  { %v1206_v57 = vpop.eup %931  ;;  %v478_v59 = vsub.f32 1.0, %v477_v53  ;;  %v507_v61 = vmul.f32 %v1200_v54, %v1184_v41  ;;  %vm512_vm0 = vweird.f32 %v1200_v54  ;;  %vm498_vm8 = vmor %vm496_vm9, %vm497_vm14  ;;  %vm511_vm9 = vweird.f32 %v1184_v41 }
 0x2f0   :  { %v1214_v62 = vpop.eup %933  ;;  %v493_v63 = vsub.f32 1.0, %v492_v55  ;;  %v522_v4 = vmul.f32 %v1206_v57, %v1186_v42  ;;  %vm527_vm7 = vweird.f32 %v1206_v57  ;;  %v533_v42 = vor.u32 1.1754944e-38, %v532_v18 }
 0x2f1   :  { %v1219_v5 = vpop.eup %935  ;;  %v479_v6 = vmul.f32 %v926_v48, %v478_v59  ;;  %v508_v7 = vsub.f32 1.0, %v507_v61  ;;  %v537_v13 = vmul.f32 %v1214_v62, %v1188_v43  ;;  %v547_v53 = vand.u32 2147483648, %v1188_v43 }
 0x2f2   :  { %v494_v14 = vmul.f32 %v928_v51, %v493_v63  ;;  %v523_v15 = vsub.f32 1.0, %v522_v4  ;;  %v552_v16 = vmul.f32 %v1219_v5, %v1190_v44  ;;  %v1235_v27 = vpop.eup %937  ;;  %vm557_vm14 = vweird.f32 %v1219_v5 }
 0x2f3   :  { %v480_v17 = vadd.f32 %v926_v48, %v479_v6  ;;  %v509_v19 = vmul.f32 %v1200_v54, %v508_v7  ;;  %v538_v26 = vsub.f32 1.0, %v537_v13  ;;  %v1254_v38 = vpop.eup %939  ;;  %v582_v41 = vmul.f32 %v1235_v27, %v1196_v49 }
 0x2f4   :  { %v495_v22 = vadd.f32 %v928_v51, %v494_v14  ;;  %v524_v23 = vmul.f32 %v1206_v57, %v523_v15  ;;  %v553_v31 = vsub.f32 1.0, %v552_v16  ;;  %v567_v50 = vmul.f32 %v1254_v38, %v1198_v52 }
 0x2f5   :  { %v484_v24 = vsel %vm483_vm15, %v926_v48, %v480_v17  ;;  %v510_v25 = vadd.f32 %v1200_v54, %v509_v19  ;;  %vm541_vm15 = vweird.f32 %v1188_v43  ;;  %v560_v59 = vand.u32 2147483647, %v1190_v44 }
 0x2f6   :  { %v499_v28 = vsel %vm498_vm8, %v928_v51, %v495_v22  ;;  %v489_v29 = vsel %vm1208_vm12, %v488_v1, %v484_v24  ;;  %v525_v30 = vadd.f32 %v1206_v57, %v524_v23  ;;  %vm513_vm8 = vmor %vm511_vm9, %vm512_vm0  ;;  %v554_v40 = vmul.f32 %v1219_v5, %v553_v31  ;;  %v41_v22 = vld [vmem:[#allocation2 + $0x4] sm:$0xff]  }
 0x2f7   :  { %v504_v32 = vsel %vm1202_vm10, %v503_v58, %v499_v28  ;;  %v490_v33 = vmul.f32 %v1149_v3, %v489_v29  ;;  %vm528_vm12 = vmor %vm526_vm11, %vm527_vm7  ;;  %v514_v37 = vsel %vm513_vm8, %v1200_v54, %v510_v25  ;;  %v539_v3 = vmul.f32 %v1214_v62, %v538_v26  ;;  %v43_v29 = vld [vmem:[#allocation2 + $0xc] sm:$0xff]  }
 0x2f8   :  { %v505_v35 = vmul.f32 %v1146_v2, %v504_v32  ;;  %v529_v2 = vsel %vm528_vm12, %v1206_v57, %v525_v30  ;;  %vm516_vm10 = vcmp.eq.f32.partialorder %v515_v34, 8.507059e+37  ;;  %vm542_vm7 = vweird.f32 %v1214_v62 }
 0x2f9   :  { %606 = vperm.xlu1 %891, %v490_v33   ;;  %v519_v45 = vsel %vm516_vm10, %v518_v39, %v514_v37  ;;  %v534_v47 = vsel %vm531_vm13, %v533_v42, %v529_v2  ;;  %v540_v48 = vadd.f32 %v1214_v62, %v539_v3  ;;  %v555_v51 = vadd.f32 %v1219_v5, %v554_v40  ;;  %vm543_vm9 = vmor %vm541_vm15, %vm542_vm7 }
 0x2fa   :  { %611 = vperm.xlu0 %890, %v505_v35   ;;  %v583_v54 = vsub.f32 1.0, %v582_v41  ;;  %v520_v55 = vmul.f32 %v1144_v0, %v519_v45  ;;  %v568_v57 = vsub.f32 1.0, %v567_v50  ;;  %v535_v58 = vmul.f32 %v1153_v8, %v534_v47 }
 0x2fb   :  { %vm556_vm0 = vweird.f32 %v1190_v44  ;;  %v544_v60 = vsel %vm543_vm9, %v1214_v62, %v540_v48  ;;  %v548_v63 = vor.u32 1.1754944e-38, %v547_v53  ;;  %v563_v1 = vor.u32 1.1754944e-38, %v562_v46 }
 0x2fc   :  { %vm558_vm11 = vmor %vm556_vm0, %vm557_vm14  ;;  %v569_v61 = vmul.f32 %v1254_v38, %v568_v57  ;;  %v584_v43 = vmul.f32 %v1235_v27, %v583_v54  ;;  %vm546_vm8 = vcmp.eq.f32.partialorder %v545_v56, 8.507059e+37  ;;  %vm561_vm12 = vcmp.eq.f32.partialorder %v560_v59, 8.507059e+37 }
 0x2fd   :  { %v559_v0 = vsel %vm558_vm11, %v1219_v5, %v555_v51  ;;  %v549_v8 = vsel %vm546_vm8, %v548_v63, %v544_v60  ;;  %vm572_vm10 = vweird.f32 %v1254_v38  ;;  %vm587_vm13 = vweird.f32 %v1235_v27 }
 0x2fe   :  { %v564_v4 = vsel %vm561_vm12, %v563_v1, %v559_v0  ;;  %v570_v44 = vadd.f32 %v1254_v38, %v569_v61  ;;  %v585_v6 = vadd.f32 %v1235_v27, %v584_v43  ;;  %v577_v62 = vand.u32 2147483648, %v1198_v52 }
 0x2ff   :  { %v550_v5 = vmul.f32 %v1155_v9, %v549_v8  ;;  %v592_v7 = vand.u32 2147483648, %v1196_v49  ;;  %vm571_vm7 = vweird.f32 %v1198_v52  ;;  %v575_v13 = vand.u32 2147483647, %v1198_v52  ;;  %v47_v8 = vld [vmem:[#allocation2 + $0x1c] sm:$0xf] }
 0x300   :  { %v565_v14 = vmul.f32 %v1162_v11, %v564_v4  ;;  %vm586_vm14 = vweird.f32 %v1196_v49  ;;  %v590_v15 = vand.u32 2147483647, %v1196_v49  ;;  %vm573_vm15 = vmor %vm571_vm7, %vm572_vm10  ;;  %v578_v17 = vor.u32 1.1754944e-38, %v577_v62  ;;  %v40_v49 = vld [vmem:[#allocation2] sm:$0xf] }
 0x301   :  { %616 = vperm.xlu1 %891, %v520_v55   ;;  %vm588_vm0 = vmor %vm586_vm14, %vm587_vm13  ;;  %v574_v16 = vsel %vm573_vm15, %v1254_v38, %v570_v44  ;;  %v593_v18 = vor.u32 1.1754944e-38, %v592_v7  ;;  %vm576_vm9 = vcmp.eq.f32.partialorder %v575_v13, 8.507059e+37  ;;  %v596_v23 = vunpack.c.l.bf16 %v40_v49  ;;  %v45_v38 = vld [vmem:[#allocation2 + $0x14] sm:$0xff]  }
 0x302   :  { %621 = vperm.xlu0 %890, %v535_v58   ;;  %v589_v9 = vsel %vm588_vm0, %v1235_v27, %v585_v6  ;;  %vm591_vm11 = vcmp.eq.f32.partialorder %v590_v15, 8.507059e+37  ;;  %v579_v19 = vsel %vm576_vm9, %v578_v17, %v574_v16  ;;  %v597_v24 = vunpack.c.l.bf16 %v41_v22 }
 0x303   :  { %v594_v52 = vsel %vm591_vm11, %v593_v18, %v589_v9  ;;  %v580_v11 = vmul.f32 %v1164_v12, %v579_v19  ;;  %v598_v32 = vunpack.c.h.bf16 %v41_v22  ;;  %v599_v33 = vunpack.c.l.bf16 %v43_v29 }
 0x304   :  { %v595_v20 = vmul.f32 %v1158_v10, %v594_v52  ;;  %v600_v42 = vunpack.c.h.bf16 %v43_v29  ;;  %v601_v48 = vunpack.c.l.bf16 %v45_v38  ;;  %v602_v7 = vunpack.c.h.bf16 %v45_v38 }
 0x305   :  { %v603_v16 = vunpack.c.l.bf16 %v47_v8  ;;  %vm1336_vm8 = vcmask 1047559   ;;  %vm1337_vm12 = vcmask 64512  }
 0x309   :  { %626 = vperm.xlu1 %891, %v550_v5  }
 0x30a   :  { %631 = vperm.xlu0 %890, %v565_v14  }
 0x311   :  { %636 = vperm.xlu1 %891, %v580_v11  }
 0x312   :  { %641 = vperm.xlu0 %890, %v595_v20  }
 0x36b   :  { %v607_v25 = vpop.permute.xlu1 %606 }
 0x36c   :  { %v612_v26 = vpop.permute.xlu0 %611  ;;  %v644_v28 = vmul.f32 %v607_v25, %v596_v23  ;;  %v717_v46 = vperm.slane %v607_v25, %v1126_v21 }
 0x36d   :  { %v645_v27 = vmul.f32 %v612_v26, %v597_v24  ;;  %v718_v45 = vperm.slane %v612_v26, %v1126_v21 }
 0x36e   :  { %v652_v31 = vrot.slane %v644_v28, 4 }
 0x36f   :  { %v658_v30 = vrot.slane %v645_v27, 4  ;;  %v725_v59 = vsel %vm348_vm1, %v718_v45, %v717_v46 }
 0x370   :  { %v653_v35 = vadd.f32 %v652_v31, %v644_v28 }
 0x371   :  { %v659_v34 = vadd.f32 %v658_v30, %v645_v27 }
 0x372   :  { %v654_v39 = vrot.slane %v653_v35, 2 }
 0x373   :  { %v617_v12 = vpop.permute.xlu1 %616  ;;  %v660_v2 = vrot.slane %v659_v34, 2 }
 0x374   :  { %v622_v36 = vpop.permute.xlu0 %621  ;;  %v646_v10 = vmul.f32 %v617_v12, %v598_v32  ;;  %v719_v51 = vperm.slane %v617_v12, %v1126_v21  ;;  %v655_v54 = vadd.f32 %v654_v39, %v653_v35 }
 0x375   :  { %v647_v37 = vmul.f32 %v622_v36, %v599_v33  ;;  %v661_v53 = vadd.f32 %v660_v2, %v659_v34  ;;  %v720_v60 = vperm.slane %v622_v36, %v1126_v21 }
 0x376   :  { %v664_v3 = vrot.slane %v646_v10, 4  ;;  %v726_v63 = vsel %vm350_vm2, %v719_v51, %v725_v59  ;;  %v656_v44 = vrot.slane %v655_v54, 1 }
 0x377   :  { %v670_v40 = vrot.slane %v647_v37, 4  ;;  %v662_v4 = vrot.slane %v661_v53, 1  ;;  %v727_v15 = vsel %vm352_vm3, %v720_v60, %v726_v63 }
 0x378   :  { %v665_v41 = vadd.f32 %v664_v3, %v646_v10  ;;  %v657_v52 = vadd.f32 %v656_v44, %v655_v54 }
 0x379   :  { %v671_v47 = vadd.f32 %v670_v40, %v647_v37  ;;  %v663_v19 = vadd.f32 %v662_v4, %v661_v53 }
 0x37a   :  { %v666_v50 = vrot.slane %v665_v41, 2 }
 0x37b   :  { %v627_v55 = vpop.permute.xlu1 %626  ;;  %v672_v56 = vrot.slane %v671_v47, 2  ;;  %v708_v36 = vsel %vm348_vm1, %v663_v19, %v657_v52  ;;  %vm1338_vm1 = vmmov %vm1336_vm8 }
 0x37c   :  { %v632_v57 = vpop.permute.xlu0 %631  ;;  %v648_v58 = vmul.f32 %v627_v55, %v600_v42  ;;  %v667_v0 = vadd.f32 %v666_v50, %v665_v41  ;;  %v721_v1 = vperm.slane %v627_v55, %v1126_v21 }
 0x37d   :  { %v649_v61 = vmul.f32 %v632_v57, %v601_v48  ;;  %v673_v62 = vadd.f32 %v672_v56, %v671_v47  ;;  %v722_v14 = vperm.slane %v632_v57, %v1126_v21 }
 0x37e   :  { %v676_v43 = vrot.slane %v648_v58, 4  ;;  %v668_v9 = vrot.slane %v667_v0, 1  ;;  %v728_v18 = vsel %vm354_vm4, %v721_v1, %v727_v15 }
 0x37f   :  { %v682_v6 = vrot.slane %v649_v61, 4  ;;  %v674_v49 = vrot.slane %v673_v62, 1  ;;  %v729_v29 = vsel %vm356_vm5, %v722_v14, %v728_v18 }
 0x380   :  { %v677_v5 = vadd.f32 %v676_v43, %v648_v58  ;;  %v669_v30 = vadd.f32 %v668_v9, %v667_v0 }
 0x381   :  { %v683_v13 = vadd.f32 %v682_v6, %v649_v61  ;;  %v675_v10 = vadd.f32 %v674_v49, %v673_v62 }
 0x382   :  { %v678_v17 = vrot.slane %v677_v5, 2  ;;  %v709_v3 = vsel %vm350_vm2, %v669_v30, %v708_v36 }
 0x383   :  { %v684_v11 = vrot.slane %v683_v13, 2  ;;  %v637_v20 = vpop.permute.xlu1 %636  ;;  %v710_v45 = vsel %vm352_vm3, %v675_v10, %v709_v3 }
 0x384   :  { %v679_v22 = vadd.f32 %v678_v17, %v677_v5  ;;  %v642_v23 = vpop.permute.xlu0 %641  ;;  %v650_v24 = vmul.f32 %v637_v20, %v602_v7  ;;  %v723_v25 = vperm.slane %v637_v20, %v1126_v21 }
 0x385   :  { %v685_v26 = vadd.f32 %v684_v11, %v683_v13  ;;  %v651_v28 = vmul.f32 %v642_v23, %v603_v16  ;;  %v724_v27 = vperm.slane %v642_v23, %v1126_v21 }
 0x386   :  { %v680_v31 = vrot.slane %v679_v22, 1  ;;  %v688_v32 = vrot.slane %v650_v24, 4  ;;  %v730_v33 = vsel %vm358_vm6, %v723_v25, %v729_v29 }
 0x387   :  { %v694_v34 = vrot.slane %v651_v28, 4  ;;  %v731_v35 = vsel %vm1336_vm8, %v724_v27, %v730_v33  ;;  %v686_v37 = vrot.slane %v685_v26, 1 }
 0x388   :  { %v689_v12 = vadd.f32 %v688_v32, %v650_v24  ;;  %733 = vst.msk [vmem:[#allocation6] sm:$0xff] %vm1337_vm12, %v731_v35  ;;  %v681_v38 = vadd.f32 %v680_v31, %v679_v22 }
 0x389   :  { %v695_v21 = vadd.f32 %v694_v34, %v651_v28  ;;  %755 = dma.vmem_to_hbm [thread:$0]  %s751_s4, 128, %s753_s14, [#allocation7]   ;;  %v687_v41 = vadd.f32 %v686_v37, %v685_v26 }
 0x38a   :  { %v690_v2 = vrot.slane %v689_v12, 2  ;;  %v711_v47 = vsel %vm354_vm4, %v681_v38, %v710_v45 }
 0x38b   :  { %v696_v39 = vrot.slane %v695_v21, 2  ;;  %v712_v53 = vsel %vm356_vm5, %v687_v41, %v711_v47 }
 0x38c   :  { %v691_v40 = vadd.f32 %v690_v2, %v689_v12 }
 0x38d   :  { %v697_v42 = vadd.f32 %v696_v39, %v695_v21 }
 0x38e   :  { %v692_v46 = vrot.slane %v691_v40, 1 }
 0x38f   :  { %v698_v48 = vrot.slane %v697_v42, 1 }
 0x390   :  { %v693_v50 = vadd.f32 %v692_v46, %v691_v40 }
 0x391   :  { %v699_v51 = vadd.f32 %v698_v48, %v697_v42 }
 0x392   :  { %v713_v54 = vsel %vm358_vm6, %v693_v50, %v712_v53 }
 0x393   :  { %v714_v55 = vsel %vm1338_vm1, %v699_v51, %v713_v54 }
 0x394   :  { %716 = vst [vmem:[#allocation5] sm:$0xff] %v714_v55 }
 0x395   :  { %744 = dma.vmem_to_hbm [thread:$0]  %s740_s15, 128, %s742_s18, [#allocation4]  }
 0x396   :  { %1015 = dma.done.wait [#allocation4], 128  }
 0x397   :  { %1016 = vsyncadd [#allocation4], 4294967168 }
 0x398   :  { %1017 = dma.done.wait [#allocation7], 128  }
 0x399   :  { %1018 = vsyncadd [#allocation7], 4294967168 }
 0x39a   :  { %764 = vsyncpa [#allocation3], 1 }
 0x39b   :  { %765 = vsyncpa [#allocation4], 1 }
 0x39c   :  { %766 = vsyncpa [#allocation7], 1 }

</bundles_post_ra>
